<compile_context>
chip_gen: v5e
topology: v5e:2x2
jax: 0.10.0
libtpu: 0.0.40
codegen_flags: <defaults>
</compile_context>

<pallas_src>
import jax
import jax.numpy as jnp
from jax.experimental import pallas as pl
from jax.experimental.pallas import tpu as pltpu


def gain_table_kernel(gains_ref, idx_ref, out_ref):
    # gains_ref : SMEM (num_images,) f32 -- precomputed 2**(table - table[neutral])
    # idx_ref   : VMEM (tile_rows, lane) or (tile_elems,) integer image indices
    # out_ref   : VMEM same shape as idx_ref, f32
    idx = idx_ref[...].astype(jnp.int32)   # widen in-register; HBM traffic stays narrow
    num_images = gains_ref.shape[0]

    # Entry 0 is the default (saves one compare+select); out-of-range indices
    # therefore map to entry 0 (PyTorch nn.Embedding would raise instead).
    out = jnp.full(idx.shape, gains_ref[0], dtype=jnp.float32)
    for k in range(1, num_images):
        out = jnp.where(idx == k, gains_ref[k], out)
    out_ref[...] = out


def _round_up(x, m):
    return ((x + m - 1) // m) * m


def _pick_tile(extent, max_tile, mult):
    """Block size along the single tiled (leading) dim.

    A full-extent block is always a legal block shape, so use it for small
    inputs.  Otherwise pick a multiple of `mult` (sublane-packing constraint
    of the index dtype), capped at `max_tile`, and aim for >= 4 grid steps so
    both v7x TensorCores get work and DMA/compute overlap survives.
    """
    if extent <= min(max_tile, 4 * mult):
        return extent
    return max(mult, min(max_tile, _round_up(pl.cdiv(extent, 4), mult)))


def _launch(gains, x_arr, block):
    """pallas_call over a 1-D grid along the leading dim of x_arr (1-D or 2-D)."""
    idx_map = (lambda i: (i, 0)) if x_arr.ndim == 2 else (lambda i: (i,))
    grid = (pl.cdiv(x_arr.shape[0], block[0]),)
    return pl.pallas_call(
        gain_table_kernel,
        out_shape=jax.ShapeDtypeStruct(x_arr.shape, jnp.float32),
        grid_spec=pltpu.PrefetchScalarGridSpec(
            num_scalar_prefetch=0,
            grid=grid,
            in_specs=[
                # Tiny gains table: staged once into SMEM for the whole call.
                pl.BlockSpec(memory_space=pltpu.MemorySpace.SMEM),
                pl.BlockSpec(block, idx_map),
            ],
            out_specs=pl.BlockSpec(block, idx_map),
        ),
        compiler_params=pltpu.CompilerParams(
            dimension_semantics=("parallel",),   # shard grid across v7x's 2 TCs
            vmem_limit_bytes=32 << 20,           # safe on v5e/v6e/v7x; blocks use <=16 MiB
        ),
    )(gains, x_arr)


def gain_table_forward(table_weight, x_idx, neutral_idx, *, lane=1024, tile_rows=1024):
    """Pallas equivalent of gain_table.forward(x, neutral_idx).

    table_weight : (num_images, 1) float32 embedding weights
    x_idx        : integer index tensor, any shape / any integer dtype
    neutral_idx  : python int or scalar int array
    returns      : x_idx.shape + (1,) float32
    """
    x_idx = jnp.asarray(x_idx)
    orig_shape = x_idx.shape

    if not jnp.issubdtype(x_idx.dtype, jnp.integer):
        x_idx = x_idx.astype(jnp.int32)
    elif x_idx.dtype.itemsize > 4:          # int64 under x64: halve HBM bytes
        x_idx = x_idx.astype(jnp.int32)
    # int8/int16/int32/uint* are kept as-is: the op is HBM-bound and narrow
    # index dtypes cut input traffic 2-4x; the kernel widens in-register.

    # Tiny table preprocessing (num_images scalars): fold the neutral subtract
    # and exp2 here so the kernel is select-only.
    tbl = jnp.asarray(table_weight, jnp.float32).reshape(-1)
    neutral = jnp.asarray(neutral_idx, jnp.int32).reshape(())
    gains = jnp.exp2(tbl - tbl[neutral])                    # (num_images,) f32

    n = x_idx.size
    if n == 0:
        return jnp.zeros(orig_shape + (1,), jnp.float32)
    x_flat = x_idx.reshape(-1)

    packing = max(1, 4 // x_idx.dtype.itemsize)             # sublane packing factor
    block_elem_budget = max(tile_rows * lane, 1024)         # ~1M elems => 4+4 MiB blocks

    # ---- Aligned fast path: free reshape to a lane-dense 2-D view ->
    #      zero extra HBM passes (no pad, no output slice). ----
    lane_pick = None
    for cand in (lane,) + tuple(c for c in (512, 256, 128) if c < lane):
        if cand % 128 == 0 and n % cand == 0:
            lane_pick = cand
            break
    if lane_pick is not None:
        rows = n // lane_pick
        max_rows = max(1, block_elem_budget // lane_pick)
        tile_r = _pick_tile(rows, max_rows, 8 * packing)
        out = _launch(gains, x_flat.reshape(rows, lane_pick), (tile_r, lane_pick))
        return out.reshape(orig_shape + (1,))

    # ---- Ragged path: block the flat 1-D array directly; Pallas masks the
    #      partial last block, so there is still no pad and no slice. ----
    try:
        tile_e = _pick_tile(n, block_elem_budget, 1024 * packing)
        out = _launch(gains, x_flat, (tile_e,))
        return out.reshape(orig_shape + (1,))
    except Exception:
        # Safety net (one extra input pass + one output slice): pad the tail
        # to a lane multiple and run the known-good 2-D path.
        rows = pl.cdiv(n, lane)
        x_pad = jnp.pad(x_flat, (0, rows * lane - n)).reshape(rows, lane)
        max_rows = max(1, block_elem_budget // lane)
        tile_r = _pick_tile(rows, max_rows, 8 * packing)
        out = _launch(gains, x_pad, (tile_r, lane))
        return out.reshape(-1)[:n].reshape(orig_shape + (1,))


if __name__ == "__main__":
    key = jax.random.PRNGKey(0)
    k_table, k1, k2, k3, k4 = jax.random.split(key, 5)

    num_images = 8
    # Deterministic "exposures" for the embedding table.
    table_weight = (0.5 * jax.random.normal(k_table, (num_images, 1))).astype(jnp.float32)

    def ref_fn(x, neutral):
        return jnp.exp2(table_weight[x] - table_weight[neutral]).astype(jnp.float32)

    # 1) Small aligned input: n = 128 -> 2-D fast path, single block.
    x1 = jax.random.randint(k1, (2, 64), 0, num_images, dtype=jnp.int32)
    o1 = jax.block_until_ready(gain_table_forward(table_weight, x1, 3))
    assert o1.shape == (2, 64, 1) and o1.dtype == jnp.float32
    assert jnp.allclose(o1, ref_fn(x1, 3), rtol=1e-6, atol=1e-6)

    # 2) Ragged input: n = 6000 -> flat 1-D path, multi-step grid with a
    #    masked partial last block (small tiles forced to exercise it).
    x2 = jax.random.randint(k2, (2, 3000), 0, num_images, dtype=jnp.int32)
    o2 = jax.block_until_ready(
        gain_table_forward(table_weight, x2, 5, lane=128, tile_rows=8))
    assert o2.shape == (2, 3000, 1) and o2.dtype == jnp.float32
    assert jnp.allclose(o2, ref_fn(x2, 5), rtol=1e-6, atol=1e-6)

    # 3) Aligned multi-tile 2-D path with a masked partial last row-block.
    x3 = jax.random.randint(k3, (41, 256), 0, num_images, dtype=jnp.int32)
    o3 = jax.block_until_ready(
        gain_table_forward(table_weight, x3, jnp.int32(0), lane=256, tile_rows=8))
    assert o3.shape == (41, 256, 1) and o3.dtype == jnp.float32
    assert jnp.allclose(o3, ref_fn(x3, 0), rtol=1e-6, atol=1e-6)

    # 4) Narrow (int16) indices kept narrow end-to-end, multi-tile 2-D path.
    x4 = jax.random.randint(k4, (48, 256), 0, num_images, dtype=jnp.int32).astype(jnp.int16)
    o4 = jax.block_until_ready(
        gain_table_forward(table_weight, x4, 2, lane=256, tile_rows=16))
    assert o4.shape == (48, 256, 1) and o4.dtype == jnp.float32
    assert jnp.allclose(o4, ref_fn(x4.astype(jnp.int32), 2), rtol=1e-6, atol=1e-6)

    print("KERNEL_OK")
</pallas_src>

<mosaic_0001>
module attributes {stable_mosaic.version = 11 : i64} {
  func.func @gain_table_kernel(%arg0: i32, %arg1: memref<8xf32, #tpu.memory_space<smem>>, %arg2: memref<1x128xi32, #tpu.memory_space<vmem>>, %arg3: memref<1x128xf32, #tpu.memory_space<vmem>>) attributes {dimension_semantics = [#tpu.dimension_semantics<parallel>], iteration_bounds = array<i64: 1>, scalar_prefetch = 0 : i64, scratch_operands = 0 : i64, tpu.core_type = #tpu.core_type<tc>, window_params = [{transform_indices = @transform_0, window_bounds = array<i64: 8>}, {transform_indices = @transform_1, window_bounds = array<i64: 1, 128>}, {transform_indices = @transform_2, window_bounds = array<i64: 1, 128>}]} {
    %c0 = arith.constant 0 : index
    %c0_0 = arith.constant 0 : index
    %0 = vector.load %arg2[%c0, %c0_0] : memref<1x128xi32, #tpu.memory_space<vmem>>, vector<1x128xi32>
    %c0_1 = arith.constant 0 : index
    %1 = memref.load %arg1[%c0_1] : memref<8xf32, #tpu.memory_space<smem>>
    %2 = vector.broadcast %1 : f32 to vector<1x128xf32>
    %c1_i32 = arith.constant 1 : i32
    %3 = vector.broadcast %c1_i32 : i32 to vector<1x128xi32>
    %4 = arith.cmpi eq, %0, %3 : vector<1x128xi32>
    %c1 = arith.constant 1 : index
    %5 = memref.load %arg1[%c1] : memref<8xf32, #tpu.memory_space<smem>>
    %6 = vector.broadcast %5 : f32 to vector<1x128xf32>
    %7 = arith.select %4, %6, %2 : vector<1x128xi1>, vector<1x128xf32>
    %c2_i32 = arith.constant 2 : i32
    %8 = vector.broadcast %c2_i32 : i32 to vector<1x128xi32>
    %9 = arith.cmpi eq, %0, %8 : vector<1x128xi32>
    %c2 = arith.constant 2 : index
    %10 = memref.load %arg1[%c2] : memref<8xf32, #tpu.memory_space<smem>>
    %11 = vector.broadcast %10 : f32 to vector<1x128xf32>
    %12 = arith.select %9, %11, %7 : vector<1x128xi1>, vector<1x128xf32>
    %c3_i32 = arith.constant 3 : i32
    %13 = vector.broadcast %c3_i32 : i32 to vector<1x128xi32>
    %14 = arith.cmpi eq, %0, %13 : vector<1x128xi32>
    %c3 = arith.constant 3 : index
    %15 = memref.load %arg1[%c3] : memref<8xf32, #tpu.memory_space<smem>>
    %16 = vector.broadcast %15 : f32 to vector<1x128xf32>
    %17 = arith.select %14, %16, %12 : vector<1x128xi1>, vector<1x128xf32>
    %c4_i32 = arith.constant 4 : i32
    %18 = vector.broadcast %c4_i32 : i32 to vector<1x128xi32>
    %19 = arith.cmpi eq, %0, %18 : vector<1x128xi32>
    %c4 = arith.constant 4 : index
    %20 = memref.load %arg1[%c4] : memref<8xf32, #tpu.memory_space<smem>>
    %21 = vector.broadcast %20 : f32 to vector<1x128xf32>
    %22 = arith.select %19, %21, %17 : vector<1x128xi1>, vector<1x128xf32>
    %c5_i32 = arith.constant 5 : i32
    %23 = vector.broadcast %c5_i32 : i32 to vector<1x128xi32>
    %24 = arith.cmpi eq, %0, %23 : vector<1x128xi32>
    %c5 = arith.constant 5 : index
    %25 = memref.load %arg1[%c5] : memref<8xf32, #tpu.memory_space<smem>>
    %26 = vector.broadcast %25 : f32 to vector<1x128xf32>
    %27 = arith.select %24, %26, %22 : vector<1x128xi1>, vector<1x128xf32>
    %c6_i32 = arith.constant 6 : i32
    %28 = vector.broadcast %c6_i32 : i32 to vector<1x128xi32>
    %29 = arith.cmpi eq, %0, %28 : vector<1x128xi32>
    %c6 = arith.constant 6 : index
    %30 = memref.load %arg1[%c6] : memref<8xf32, #tpu.memory_space<smem>>
    %31 = vector.broadcast %30 : f32 to vector<1x128xf32>
    %32 = arith.select %29, %31, %27 : vector<1x128xi1>, vector<1x128xf32>
    %c7_i32 = arith.constant 7 : i32
    %33 = vector.broadcast %c7_i32 : i32 to vector<1x128xi32>
    %34 = arith.cmpi eq, %0, %33 : vector<1x128xi32>
    %c7 = arith.constant 7 : index
    %35 = memref.load %arg1[%c7] : memref<8xf32, #tpu.memory_space<smem>>
    %36 = vector.broadcast %35 : f32 to vector<1x128xf32>
    %37 = arith.select %34, %36, %32 : vector<1x128xi1>, vector<1x128xf32>
    %c0_2 = arith.constant 0 : index
    %c0_3 = arith.constant 0 : index
    %38 = vector.load %arg3[%c0_2, %c0_3] : memref<1x128xf32, #tpu.memory_space<vmem>>, vector<1x128xf32>
    tpu.vector_store %arg3[%c0_2, %c0_3], %37 {strides = array<i32>} : memref<1x128xf32, #tpu.memory_space<vmem>>, vector<1x128xf32>,
    return
  }
  func.func @transform_0(%arg0: i32) -> i32 {
    %c0_i32 = arith.constant 0 : i32
    %c0_i32_0 = arith.constant 0 : i32
    return %c0_i32 : i32
  }
  func.func @transform_1(%arg0: i32) -> (i32, i32) {
    %c0_i32 = arith.constant 0 : i32
    %c0_i32_0 = arith.constant 0 : i32
    return %arg0, %c0_i32 : i32, i32
  }
  func.func @transform_2(%arg0: i32) -> (i32, i32) {
    %c0_i32 = arith.constant 0 : i32
    %c0_i32_0 = arith.constant 0 : i32
    return %arg0, %c0_i32 : i32, i32
  }
}

</mosaic_0001>

<bundles_post_ra>
// kernel: tpu_custom_call.1
= control target key start
LH: loop header
LB: loop body
LE: loop exit
PB: predicated region body
PF: predicated region fallthrough
CT: control target
= control target key end

     0   :  { %7 = vsyncpa [#allocation5], 0  ;;  %s192_s0 = inlined_call_operand.hbm [shape: f32[8], index: 0, kind: input, shape index: {}]   ;;  %s193_s1 = inlined_call_operand.hbm [shape: s32[1,128], index: 1, kind: input, shape index: {}]   ;;  %s194_s2 = inlined_call_operand.hbm [shape: f32[1,128], index: 2, kind: output, shape index: {}]  }
   0x1   :  { %8 = vsyncpa [#allocation3], 0 }
   0x2   :  { %9 = vsyncpa [#allocation4], 0  ;;  %s15_s11 = sshll.u32 %s192_s0, 4  ;;  %s24_s14 = sshll.u32 %s193_s1, 4  ;;  %s16_s11 = int_to_ptr.hbm [resolvable:$true] %s15_s11  ;;  %s25_s14 = int_to_ptr.hbm [resolvable:$true] %s24_s14 }
   0x3   :  { %s165_s15 = smov [#allocation2]   ;;  %s166_s16 = smov [#allocation6]  }
   0x4   :  { %18 = dma.hbm_to_smem %s16_s11, 16, %s165_s15, [#allocation5]  }
   0x5   :  { %s26_s17 = sshll.u32 %s166_s16, 4  ;;  %s27_s17 = int_to_ptr.vmem [resolvable:$true] %s26_s17 }
   0x6   :  { %29 = dma.hbm_to_vmem [thread:$0]  %s25_s14, 16, %s27_s17, [#allocation3]  }
   0x7   :  { %159 = dma.done.wait [#allocation5], 16  }
   0x8   :  { %160 = vsyncadd [#allocation5], 4294967280 }
   0x9   :  { %161 = dma.done.wait [#allocation3], 16  }
   0xa   :  { %162 = vsyncadd [#allocation3], 4294967280 }
   0xb   :  { %38 = sfence }
   0xc   :  { %s40_s18 = sld [smem:[#allocation2]]  ;;  %v39_v0 = vld [vmem:[#allocation6] sm:$0x1]  ;;  %s167_s24 = smov [#allocation7]  }
   0xd   :  { %s89_s19 = sld [smem:[#allocation2 + $0x1]]  ;;  %vm42_vm0 = vcmp.eq.s32.totalorder %v39_v0, 1  ;;  %vm46_vm1 = vcmp.eq.s32.totalorder %v39_v0, 2  ;;  %vm50_vm2 = vcmp.eq.s32.totalorder %v39_v0, 3  ;;  %vm54_vm3 = vcmp.eq.s32.totalorder %v39_v0, 4  ;;  %s76_s25 = sshll.u32 %s167_s24, 4  ;;  %s77_s25 = int_to_ptr.vmem [resolvable:$true] %s76_s25 }
   0xe   :  { %s90_s0 = sld [smem:[#allocation2 + $0x2]]  ;;  %vm58_vm4 = vcmp.eq.s32.totalorder %v39_v0, 5  ;;  %vm62_vm5 = vcmp.eq.s32.totalorder %v39_v0, 6  ;;  %s78_s28 = sshll.u32 %s194_s2, 4  ;;  %vm66_vm6 = vcmp.eq.s32.totalorder %v39_v0, 7  ;;  %s79_s28 = int_to_ptr.hbm [resolvable:$true] %s78_s28 }
   0xf   :  { %s91_s20 = sld [smem:[#allocation2 + $0x3]] }
  0x10   :  { %s92_s21 = sld [smem:[#allocation2 + $0x4]] }
  0x11   :  { %s93_s1 = sld [smem:[#allocation2 + $0x5]] }
  0x12   :  { %v41_v1 = vstv %s40_s18  ;;  %s94_s22 = sld [smem:[#allocation2 + $0x6]] }
  0x13   :  { %v44_v2 = vstv %s89_s19  ;;  %s95_s23 = sld [smem:[#allocation2 + $0x7]] }
  0x14   :  { %v45_v3 = vsel %vm42_vm0, %v44_v2, %v41_v1  ;;  %v48_v4 = vstv %s90_s0 }
  0x15   :  { %v49_v5 = vsel %vm46_vm1, %v48_v4, %v45_v3  ;;  %v52_v6 = vstv %s91_s20 }
  0x16   :  { %v53_v7 = vsel %vm50_vm2, %v52_v6, %v49_v5  ;;  %v56_v8 = vstv %s92_s21 }
  0x17   :  { %v57_v9 = vsel %vm54_vm3, %v56_v8, %v53_v7  ;;  %v60_v10 = vstv %s93_s1 }
  0x18   :  { %v61_v11 = vsel %vm58_vm4, %v60_v10, %v57_v9  ;;  %v64_v12 = vstv %s94_s22 }
  0x19   :  { %v65_v13 = vsel %vm62_vm5, %v64_v12, %v61_v11  ;;  %v68_v14 = vstv %s95_s23 }
  0x1a   :  { %v69_v15 = vsel %vm66_vm6, %v68_v14, %v65_v13 }
  0x1b   :  { %70 = vst [vmem:[#allocation7] sm:$0x1] %v69_v15 }
  0x1c   :  { %81 = dma.vmem_to_hbm [thread:$0]  %s77_s25, 16, %s79_s28, [#allocation4]  }
  0x1d   :  { %163 = dma.done.wait [#allocation4], 16  }
  0x1e   :  { %164 = vsyncadd [#allocation4], 4294967280 }
  0x1f   :  { %86 = vsyncpa [#allocation3], 1 }
  0x20   :  { %87 = vsyncpa [#allocation4], 1 }
  0x21   :  { %88 = vsyncpa [#allocation5], 1 }

</bundles_post_ra>
